<compile_context>
chip_gen: v6e
topology: v6e:2x2x1
jax: 0.10.0
libtpu: 0.0.40
codegen_flags: <defaults>
</compile_context>

<pallas_src>
import jax
import jax.numpy as jnp
from jax.experimental import pallas as pl
from jax.experimental.pallas import tpu as pltpu

BN_EPS = 0.8          # nn.BatchNorm1d(nb_units, 0.8): second positional arg is eps
LEAKY_SLOPE = 0.2
_VMEM_LIMIT = 32 * 1024 * 1024


def _round_up(x, m):
    return ((x + m - 1) // m) * m


def generator_forward(z, w1_t, b1, gamma, beta, w2_t, b2, tile_b=None):
    """z: (B, input_dim) -> (B, output_dim) float32.

    w1_t: (input_dim, nb_units), w2_t: (nb_units, output_dim) (pre-transposed).
    b1/gamma/beta: (1, nb_units); b2: (1, output_dim).
    Note: b1 is mathematically cancelled by BatchNorm's (training-mode) mean
    subtraction, so it never enters the kernels.
    """
    del b1  # cancelled by BN mean subtraction (h - mean(h) is shift-invariant)

    B, in_dim = z.shape
    nb_units = w1_t.shape[1]
    out_dim = w2_t.shape[1]

    # ---- batch (sublane) tiling: large tiles -> few grid steps ----
    if tile_b is None:
        tile_b = 4096 if B > 4096 else _round_up(max(B, 8), 8)
    tile_b = _round_up(tile_b, 8)
    n_tiles = -(-B // tile_b)
    b_pad = n_tiles * tile_b

    # ---- lane-dense output: pad output feature dim to a multiple of 128 ----
    out_pad = _round_up(max(out_dim, 128), 128)

    # ---- wrapper-side dtype prep / packing / padding ----
    z_bf = z.astype(jnp.bfloat16)                       # halve streamed-in bytes
    z_p = z_bf if b_pad == B else jnp.pad(z_bf, ((0, b_pad - B), (0, 0)))
    w1_bf = w1_t.astype(jnp.bfloat16)
    w2_bf = jnp.pad(w2_t, ((0, 0), (0, out_pad - out_dim))).astype(jnp.bfloat16)
    b2_p = jnp.pad(b2, ((0, 0), (0, out_pad - out_dim))).astype(jnp.float32)
    # pack per-feature BN params: row0 = gamma, row1 = beta
    bn_params = jnp.concatenate(
        [gamma.astype(jnp.float32), beta.astype(jnp.float32)], axis=0)

    inv_n = 1.0 / float(B)   # padded z rows are exactly zero -> contribute 0 to sums

    # ---------------- fused single-tile fast path ----------------
    def fused_kernel(z_ref, w1_ref, bn_ref, w2_ref, b2_ref, out_ref):
        hw = jnp.dot(z_ref[...], w1_ref[...], preferred_element_type=jnp.float32)
        mean = jnp.sum(hw, axis=0, keepdims=True) * inv_n
        var = jnp.sum(hw * hw, axis=0, keepdims=True) * inv_n - mean * mean
        inv_std = jax.lax.rsqrt(var + BN_EPS)
        scale = bn_ref[0:1, :] * inv_std                 # gamma * inv_std
        shift = bn_ref[1:2, :] - mean * scale            # beta - mean * scale
        hn = hw * scale + shift
        a = jnp.maximum(hn, LEAKY_SLOPE * hn)            # LeakyReLU(0.2)
        o = jnp.dot(a.astype(jnp.bfloat16), w2_ref[...],
                    preferred_element_type=jnp.float32) + b2_ref[...]
        out_ref[...] = jnp.tanh(o).astype(out_ref.dtype)

    # ---------------- pass A: full-batch BN statistics ----------------
    def stats_kernel(z_ref, w1_ref, bn_ref, ss_ref, acc_ref):
        i = pl.program_id(0)

        @pl.when(i == 0)
        def _init():
            acc_ref[...] = jnp.zeros_like(acc_ref)

        hw = jnp.dot(z_ref[...], w1_ref[...], preferred_element_type=jnp.float32)
        acc_ref[0:1, :] += jnp.sum(hw, axis=0, keepdims=True)
        acc_ref[1:2, :] += jnp.sum(hw * hw, axis=0, keepdims=True)

        @pl.when(i == pl.num_programs(0) - 1)
        def _finalize():
            mean = acc_ref[0:1, :] * inv_n
            var = acc_ref[1:2, :] * inv_n - mean * mean   # biased (training) var
            inv_std = jax.lax.rsqrt(var + BN_EPS)
            scale = bn_ref[0:1, :] * inv_std
            shift = bn_ref[1:2, :] - mean * scale
            ss_ref[0:1, :] = scale
            ss_ref[1:2, :] = shift

    # ---------------- pass B: normalize + LeakyReLU + Linear2 + Tanh ----------------
    def apply_kernel(z_ref, w1_ref, ss_ref, w2_ref, b2_ref, out_ref):
        hw = jnp.dot(z_ref[...], w1_ref[...], preferred_element_type=jnp.float32)
        hn = hw * ss_ref[0:1, :] + ss_ref[1:2, :]         # 1 mul + 1 add per row
        a = jnp.maximum(hn, LEAKY_SLOPE * hn)
        o = jnp.dot(a.astype(jnp.bfloat16), w2_ref[...],
                    preferred_element_type=jnp.float32) + b2_ref[...]
        out_ref[...] = jnp.tanh(o).astype(out_ref.dtype)  # full-width bf16 lane store

    if n_tiles == 1:
        # Whole batch fits one tile: single grid-less call, Linear1 computed once.
        out_padded = pl.pallas_call(
            fused_kernel,
            out_shape=jax.ShapeDtypeStruct((b_pad, out_pad), jnp.bfloat16),
            compiler_params=pltpu.CompilerParams(vmem_limit_bytes=_VMEM_LIMIT),
        )(z_p, w1_bf, bn_params, w2_bf, b2_p)
    else:
        resident = lambda i: (0, 0)
        tiled = lambda i: (i, 0)

        scale_shift = pl.pallas_call(
            stats_kernel,
            out_shape=jax.ShapeDtypeStruct((2, nb_units), jnp.float32),
            grid_spec=pltpu.PrefetchScalarGridSpec(
                num_scalar_prefetch=0,
                grid=(n_tiles,),
                in_specs=[
                    pl.BlockSpec((tile_b, in_dim), tiled),        # z (bf16, streamed)
                    pl.BlockSpec((in_dim, nb_units), resident),   # W1^T (bf16)
                    pl.BlockSpec((2, nb_units), resident),        # [gamma; beta]
                ],
                out_specs=pl.BlockSpec((2, nb_units), resident),  # folded scale/shift
                scratch_shapes=[pltpu.VMEM((2, nb_units), jnp.float32)],
            ),
            compiler_params=pltpu.CompilerParams(
                dimension_semantics=("arbitrary",),               # sequential accumulation
                vmem_limit_bytes=_VMEM_LIMIT,
            ),
        )(z_p, w1_bf, bn_params)

        out_padded = pl.pallas_call(
            apply_kernel,
            out_shape=jax.ShapeDtypeStruct((b_pad, out_pad), jnp.bfloat16),
            grid_spec=pltpu.PrefetchScalarGridSpec(
                num_scalar_prefetch=0,
                grid=(n_tiles,),
                in_specs=[
                    pl.BlockSpec((tile_b, in_dim), tiled),        # z (bf16, streamed)
                    pl.BlockSpec((in_dim, nb_units), resident),   # W1^T (bf16)
                    pl.BlockSpec((2, nb_units), resident),        # scale/shift
                    pl.BlockSpec((nb_units, out_pad), resident),  # W2^T (bf16, lane-padded)
                    pl.BlockSpec((1, out_pad), resident),         # b2 (lane-padded)
                ],
                out_specs=pl.BlockSpec((tile_b, out_pad), tiled),
            ),
            compiler_params=pltpu.CompilerParams(
                dimension_semantics=("parallel",),                # megacore-shard on v7x
                vmem_limit_bytes=_VMEM_LIMIT,
            ),
        )(z_p, w1_bf, scale_shift, w2_bf, b2_p)

    return out_padded[:B, :out_dim].astype(jnp.float32)


def reference_forward(z, w1_t, b1, gamma, beta, w2_t, b2):
    h = z @ w1_t + b1
    mean = h.mean(axis=0, keepdims=True)
    var = ((h - mean) ** 2).mean(axis=0, keepdims=True)
    hn = (h - mean) / jnp.sqrt(var + BN_EPS) * gamma + beta
    a = jnp.where(hn > 0, hn, LEAKY_SLOPE * hn)
    return jnp.tanh(a @ w2_t + b2)


if __name__ == "__main__":
    batch = 8
    input_dim = 32
    nb_units = 128
    output_dim = 16

    key = jax.random.PRNGKey(0)
    k_z1, k_z2, k_w1, k_b1, k_g, k_bt, k_w2, k_b2 = jax.random.split(key, 8)

    # Deterministic synthetic parameters (Linear weights pre-transposed).
    w1_t = jax.random.normal(k_w1, (input_dim, nb_units), dtype=jnp.float32) * 0.05
    b1 = jax.random.normal(k_b1, (1, nb_units), dtype=jnp.float32) * 0.05
    gamma = 1.0 + 0.1 * jax.random.normal(k_g, (1, nb_units), dtype=jnp.float32)
    beta = 0.1 * jax.random.normal(k_bt, (1, nb_units), dtype=jnp.float32)
    w2_t = jax.random.normal(k_w2, (nb_units, output_dim), dtype=jnp.float32) * 0.05
    b2 = jax.random.normal(k_b2, (1, output_dim), dtype=jnp.float32) * 0.05

    # bf16 MXU inputs + bf16 output store -> bf16-level tolerance vs f32 reference.
    TOL = dict(atol=2e-2, rtol=2e-2)

    # Case 1: small batch -> single-tile fused fast path (grid-less call).
    z1 = jax.random.normal(k_z1, (batch, input_dim), dtype=jnp.float32)
    out1 = jax.block_until_ready(generator_forward(z1, w1_t, b1, gamma, beta, w2_t, b2))
    ref1 = reference_forward(z1, w1_t, b1, gamma, beta, w2_t, b2)
    assert out1.shape == (batch, output_dim)
    assert jnp.allclose(out1, ref1, **TOL), "case 1 mismatch vs JAX reference"

    # Case 2: batch not divisible by the tile -> exercises the two-call path
    # (multi-tile BN stats accumulation + parallel apply) and batch padding.
    z2 = jax.random.normal(k_z2, (20, input_dim), dtype=jnp.float32)
    out2 = jax.block_until_ready(
        generator_forward(z2, w1_t, b1, gamma, beta, w2_t, b2, tile_b=8))
    ref2 = reference_forward(z2, w1_t, b1, gamma, beta, w2_t, b2)
    assert out2.shape == (20, output_dim)
    assert jnp.allclose(out2, ref2, **TOL), "case 2 mismatch vs JAX reference"

    print("KERNEL_OK")
</pallas_src>

<mosaic_0001>
module attributes {stable_mosaic.version = 11 : i64} {
  func.func @fused_kernel(%arg0: memref<8x32xbf16, #tpu.memory_space<vmem>>, %arg1: memref<32x128xbf16, #tpu.memory_space<vmem>>, %arg2: memref<2x128xf32, #tpu.memory_space<vmem>>, %arg3: memref<128x128xbf16, #tpu.memory_space<vmem>>, %arg4: memref<1x128xf32, #tpu.memory_space<vmem>>, %arg5: memref<8x128xbf16, #tpu.memory_space<vmem>>) attributes {dimension_semantics = [], scalar_prefetch = 0 : i64, scratch_operands = 0 : i64, tpu.core_type = #tpu.core_type<tc>} {
    %c0 = arith.constant 0 : index
    %c0_0 = arith.constant 0 : index
    %0 = vector.load %arg0[%c0, %c0_0] : memref<8x32xbf16, #tpu.memory_space<vmem>>, vector<8x32xbf16>
    %c0_1 = arith.constant 0 : index
    %c0_2 = arith.constant 0 : index
    %1 = vector.load %arg1[%c0_1, %c0_2] : memref<32x128xbf16, #tpu.memory_space<vmem>>, vector<32x128xbf16>
    %cst = arith.constant dense<0.000000e+00> : vector<8x128xf32>
    %2 = tpu.matmul %0, %1, %cst {dimension_numbers = #tpu.dot_dimension_numbers<[1], [0], [0], [1], [0, 0, 1, 1], [], []>} : vector<8x32xbf16>, vector<32x128xbf16>, vector<8x128xf32> -> vector<8x128xf32>
    %cst_3 = arith.constant dense<0.000000e+00> : vector<128xf32>
    %3 = vector.multi_reduction <add>, %2, %cst_3 [0] : vector<8x128xf32> to vector<128xf32>
    %4 = vector.shape_cast %3 : vector<128xf32> to vector<1x128xf32>
    %cst_4 = arith.constant 1.250000e-01 : f32
    %5 = vector.broadcast %cst_4 : f32 to vector<1x128xf32>
    %6 = arith.mulf %4, %5 : vector<1x128xf32>
    %7 = arith.mulf %2, %2 : vector<8x128xf32>
    %cst_5 = arith.constant dense<0.000000e+00> : vector<128xf32>
    %8 = vector.multi_reduction <add>, %7, %cst_5 [0] : vector<8x128xf32> to vector<128xf32>
    %9 = vector.shape_cast %8 : vector<128xf32> to vector<1x128xf32>
    %cst_6 = arith.constant 1.250000e-01 : f32
    %10 = vector.broadcast %cst_6 : f32 to vector<1x128xf32>
    %11 = arith.mulf %9, %10 : vector<1x128xf32>
    %12 = arith.mulf %6, %6 : vector<1x128xf32>
    %13 = arith.subf %11, %12 : vector<1x128xf32>
    %cst_7 = arith.constant 8.000000e-01 : f32
    %14 = vector.broadcast %cst_7 : f32 to vector<1x128xf32>
    %15 = arith.addf %13, %14 : vector<1x128xf32>
    %16 = math.rsqrt %15 : vector<1x128xf32>
    %c0_8 = arith.constant 0 : index
    %c0_9 = arith.constant 0 : index
    %17 = vector.load %arg2[%c0_8, %c0_9] : memref<2x128xf32, #tpu.memory_space<vmem>>, vector<1x128xf32>
    %18 = arith.mulf %17, %16 : vector<1x128xf32>
    %c1 = arith.constant 1 : index
    %c0_10 = arith.constant 0 : index
    %19 = vector.load %arg2[%c1, %c0_10] : memref<2x128xf32, #tpu.memory_space<vmem>>, vector<1x128xf32>
    %20 = arith.mulf %6, %18 : vector<1x128xf32>
    %21 = arith.subf %19, %20 : vector<1x128xf32>
    %22 = vector.broadcast %18 : vector<1x128xf32> to vector<8x128xf32>
    %23 = arith.mulf %2, %22 : vector<8x128xf32>
    %24 = vector.broadcast %21 : vector<1x128xf32> to vector<8x128xf32>
    %25 = arith.addf %23, %24 : vector<8x128xf32>
    %cst_11 = arith.constant 2.000000e-01 : f32
    %26 = vector.broadcast %cst_11 : f32 to vector<8x128xf32>
    %27 = arith.mulf %26, %25 : vector<8x128xf32>
    %28 = arith.maximumf %25, %27 : vector<8x128xf32>
    %29 = arith.truncf %28 : vector<8x128xf32> to vector<8x128xbf16>
    %c0_12 = arith.constant 0 : index
    %c0_13 = arith.constant 0 : index
    %30 = vector.load %arg3[%c0_12, %c0_13] : memref<128x128xbf16, #tpu.memory_space<vmem>>, vector<128x128xbf16>
    %cst_14 = arith.constant dense<0.000000e+00> : vector<8x128xf32>
    %31 = tpu.matmul %29, %30, %cst_14 {dimension_numbers = #tpu.dot_dimension_numbers<[1], [0], [0], [1], [0, 0, 1, 1], [], []>} : vector<8x128xbf16>, vector<128x128xbf16>, vector<8x128xf32> -> vector<8x128xf32>
    %c0_15 = arith.constant 0 : index
    %c0_16 = arith.constant 0 : index
    %32 = vector.load %arg4[%c0_15, %c0_16] : memref<1x128xf32, #tpu.memory_space<vmem>>, vector<1x128xf32>
    %33 = vector.broadcast %32 : vector<1x128xf32> to vector<8x128xf32>
    %34 = arith.addf %31, %33 : vector<8x128xf32>
    %35 = math.tanh %34 : vector<8x128xf32>
    %36 = arith.truncf %35 : vector<8x128xf32> to vector<8x128xbf16>
    %c0_17 = arith.constant 0 : index
    %c0_18 = arith.constant 0 : index
    %37 = vector.load %arg5[%c0_17, %c0_18] : memref<8x128xbf16, #tpu.memory_space<vmem>>, vector<8x128xbf16>
    tpu.vector_store %arg5[%c0_17, %c0_18], %36 {strides = array<i32>} : memref<8x128xbf16, #tpu.memory_space<vmem>>, vector<8x128xbf16>,
    return
  }
}

</mosaic_0001>

<bundles_post_ra>
// kernel: tpu_custom_call.1
= control target key start
LH: loop header
LB: loop body
LE: loop exit
PB: predicated region body
PF: predicated region fallthrough
CT: control target
= control target key end

     0   :  { %10 = vsyncpa [#allocation3], 0  ;;  %s508_s0 = inlined_call_operand.hbm [shape: bf16[8,32], index: 0, kind: input, shape index: {}]   ;;  %s509_s1 = inlined_call_operand.hbm [shape: bf16[32,128], index: 1, kind: input, shape index: {}]   ;;  %s510_s2 = inlined_call_operand.vmem [shape: f32[2,128], index: 2, kind: input, shape index: {}]   ;;  %s511_s3 = inlined_call_operand.hbm [shape: bf16[128,128], index: 3, kind: input, shape index: {}]   ;;  %s512_s4 = inlined_call_operand.vmem [shape: f32[1,128], index: 4, kind: input, shape index: {}]   ;;  %s513_s5 = inlined_call_operand.hbm [shape: bf16[8,128], index: 5, kind: output, shape index: {}]  }
   0x1   :  { %11 = vsyncpa [#allocation6], 0 }
   0x2   :  { %12 = vsyncpa [#allocation4], 0  ;;  %s449_s18 = smov [#allocation5]  }
   0x3   :  { %s28_s19 = sshll.u32 %s449_s18, 4  ;;  %s29_s19 = int_to_ptr.vmem [resolvable:$true] %s28_s19 }
   0x4   :  { %s371_s20 = scalar_lea.vmem %s29_s19, 256  ;;  %p376_p1 = scmp.lt.s32.totalorder %s29_s19, %s29_s19 }
   0x5   :  { %p372_p0 = scmp.ne.s32.totalorder %s29_s19, %s371_s20  ;;  %p377_p2 = scmp.lt.s32.totalorder %s371_s20, %s371_s20 }
   0x7   :  { %p378_p3 = por %p377_p2, %p376_p1 }
   0x9   :  { %p379_p4 = pnand %p378_p3, %p372_p0 }
   0xb   :  { %382 = shalt.err (!%p379_p4)
}
   0xc   :  { %s450_s21 = smov 64   ;;  %s451_s22 = smov 4  }
   0xd   :  { %34 = dma.hbm_to_vmem [thread:$0]  %s509_s1, 256, %s29_s19, [#allocation6], %s450_s21, %s450_s21, %s451_s22  }
   0xe   :  { %s452_s25 = smov [#allocation2]   ;;  %s453_s27 = smov [#allocation7]  }
   0xf   :  { %s19_s26 = sshll.u32 %s452_s25, 4  ;;  %s42_s28 = sshll.u32 %s453_s27, 4  ;;  %s20_s26 = int_to_ptr.vmem [resolvable:$true] %s19_s26  ;;  %s43_s28 = int_to_ptr.vmem [resolvable:$true] %s42_s28 }
  0x10   :  { %s391_s29 = scalar_lea.vmem %s20_s26, 64  ;;  %p396_p6 = scmp.lt.s32.totalorder %s20_s26, %s20_s26 }
  0x11   :  { %p392_p5 = scmp.ne.s32.totalorder %s20_s26, %s391_s29  ;;  %p397_p7 = scmp.lt.s32.totalorder %s391_s29, %s391_s29 }
  0x13   :  { %p398_p8 = por %p397_p7, %p396_p6 }
  0x15   :  { %p399_p9 = pnand %p398_p8, %p392_p5 }
  0x17   :  { %402 = shalt.err (!%p399_p9)
}
  0x18   :  { %22 = dma.hbm_to_vmem [thread:$0]  %s508_s0, 64, %s20_s26, [#allocation3]  }
  0x19   :  { %s411_s7 = scalar_lea.vmem %s43_s28, 1024  ;;  %p416_p11 = scmp.lt.s32.totalorder %s43_s28, %s43_s28 }
  0x1a   :  { %p412_p10 = scmp.ne.s32.totalorder %s43_s28, %s411_s7  ;;  %p417_p12 = scmp.lt.s32.totalorder %s411_s7, %s411_s7 }
  0x1c   :  { %p418_p13 = por %p417_p12, %p416_p11 }
  0x1e   :  { %p419_p0 = pnand %p418_p13, %p412_p10 }
  0x20   :  { %422 = shalt.err (!%p419_p0)
}
  0x21   :  { %48 = dma.hbm_to_vmem [thread:$0]  %s511_s3, 1024, %s43_s28, [#allocation6], %s450_s21, %s450_s21, %s451_s22  }
  0x22   :  { %443 = dma.done.wait [#allocation3], 64  }
  0x23   :  { %444 = vsyncadd [#allocation3], 4294967232 }
  0x24   :  { %445 = dma.done.wait [#allocation6], 1280  }
  0x25   :  { %446 = vsyncadd [#allocation6], 4294966016  ;;  %v454_v0 = vmov 0.0   ;;  %vm455_vm0 = vmmov 0   ;;  %v349_v1 = vld [vmem:[#allocation5 + $0x8] sm:$0xff]   ;;  %v350_v2 = vld [vmem:[#allocation5] sm:$0xff]   ;;  %v146_v34 = vlaneseq }
  0x26   :  { %313 = vmatprep.subr.bf16.mxu0 %v454_v0  ;;  %317 = vmatprep.mubr.msk.bf16.mxu0 %vm455_vm0, %v454_v0  ;;  %vm78_vm1 = vcmask 261120   ;;  %v61_v3 = vld [vmem:[#allocation2] sm:$0xf]  ;;  %v351_v4 = vld [vmem:[#allocation7 + $0x38] sm:$0xff]   ;;  %v352_v5 = vld [vmem:[#allocation7 + $0x30] sm:$0xff]  }
  0x27   :  { %321 = vmatprep.subr.bf16.mxu1 %v454_v0  ;;  %337 = vmatprep.mubr.msk.bf16.mxu1 %vm455_vm0, %v454_v0  ;;  %v353_v6 = vld [vmem:[#allocation7 + $0x28] sm:$0xff]   ;;  %v354_v7 = vld [vmem:[#allocation7 + $0x20] sm:$0xff]   ;;  %v355_v8 = vld [vmem:[#allocation7 + $0x18] sm:$0xff]   ;;  %v147_v35 = vshrl.u32 %v146_v34, 7 }
  0x28   :  { %314 = vmatpush3.bf16.msra.mxu0 %v349_v1  ;;  %322 = vmatpush3.bf16.msra.mxu1 %v351_v4  ;;  %v356_v9 = vld [vmem:[#allocation7 + $0x10] sm:$0xff]   ;;  %v357_v10 = vld [vmem:[#allocation7 + $0x8] sm:$0xff]   ;;  %v358_v11 = vld [vmem:[#allocation7] sm:$0xff]  }
  0x29   :  { %315 = vmatprep.subr.bf16.mxu0 %v454_v0  ;;  %323 = vmatprep.subr.bf16.mxu1 %v454_v0  ;;  %v141_v36 = vld [vmem:[%s510_s2] sm:$0x1]  ;;  %v148_v37 = vsub.s32 0, %v147_v35  ;;  %v143_v40 = vld [vmem:[%s510_s2 + $0x1] sm:$0x1]  ;;  %s456_s2 = smov [#allocation8]  }
  0x2a   :  { %v292_v50 = vld [vmem:[%s512_s4] ss:$0 sm:$0xff]  ;;  %s279_s13 = sshll.u32 %s456_s2, 4  ;;  %s280_s13 = int_to_ptr.vmem [resolvable:$true] %s279_s13 }
  0x2b   :  { %s423_s14 = scalar_lea.vmem %s280_s13, 64  ;;  %p428_p2 = scmp.lt.s32.totalorder %s280_s13, %s280_s13 }
  0x2c   :  { %316 = vmatpush3.bf16.msra.mxu0 %v350_v2  ;;  %324 = vmatpush3.bf16.msra.mxu1 %v352_v5  ;;  %p424_p1 = scmp.ne.s32.totalorder %s280_s13, %s423_s14  ;;  %p429_p3 = scmp.lt.s32.totalorder %s423_s14, %s423_s14 }
  0x2d   :  { %325 = vmatprep.subr.bf16.mxu1 %v454_v0 }
  0x2e   :  { %p430_p4 = por %p429_p3, %p428_p2 }
  0x2f   :  { %318 = vmatmul.mubr.msk.bf16.vlgmr.msra.gmra.mxu0 %vm78_vm1, %v61_v3 }
  0x30   :  { %326 = vmatpush3.bf16.msra.mxu1 %v353_v6  ;;  %p431_p5 = pnand %p430_p4, %p424_p1 }
  0x31   :  { %327 = vmatprep.subr.bf16.mxu1 %v454_v0 }
  0x34   :  { %328 = vmatpush3.bf16.msra.mxu1 %v354_v7 }
  0x35   :  { %329 = vmatprep.subr.bf16.mxu1 %v454_v0 }
  0x38   :  { %330 = vmatpush3.bf16.msra.mxu1 %v355_v8 }
  0x39   :  { %331 = vmatprep.subr.bf16.mxu1 %v454_v0 }
  0x3c   :  { %332 = vmatpush3.bf16.msra.mxu1 %v356_v9 }
  0x3d   :  { %333 = vmatprep.subr.bf16.mxu1 %v454_v0 }
  0x40   :  { %334 = vmatpush3.bf16.msra.mxu1 %v357_v10 }
  0x41   :  { %335 = vmatprep.subr.bf16.mxu1 %v454_v0 }
  0x44   :  { %336 = vmatpush3.bf16.msra.mxu1 %v358_v11 }
  0xef   :  { %v116_v12 = vpop.f32.mrf.mxu0 }
  0xf0   :  { %v122_v13 = vrot.slane %v116_v12, 4  ;;  %v129_v14 = vmul.f32 %v116_v12, %v116_v12 }
  0xf1   :  { %v319_v15 = vpop.f32.mrf.mxu0 }
  0xf2   :  { %v123_v16 = vadd.f32 %v122_v13, %v116_v12  ;;  %v130_v17 = vrot.slane %v129_v14, 4 }
  0xf3   :  { %v119_v18 = vpop.f32.mrf.mxu0 }
  0xf4   :  { %v124_v19 = vrot.slane %v123_v16, 2  ;;  %v131_v20 = vadd.f32 %v130_v17, %v129_v14 }
  0xf5   :  { %v320_v21 = vpop.f32.mrf.mxu0 }
  0xf6   :  { %v125_v22 = vadd.f32 %v124_v19, %v123_v16  ;;  %v132_v23 = vrot.slane %v131_v20, 2 }
  0xf8   :  { %v126_v24 = vrot.slane %v125_v22, 1  ;;  %v133_v25 = vadd.f32 %v132_v23, %v131_v20 }
  0xfa   :  { %v127_v26 = vadd.f32 %v126_v24, %v125_v22  ;;  %v134_v27 = vrot.slane %v133_v25, 1 }
  0xfc   :  { %v128_v28 = vmul.f32 0.125, %v127_v26  ;;  %v135_v29 = vadd.f32 %v134_v27, %v133_v25 }
  0xfe   :  { %v136_v30 = vmul.f32 0.125, %v135_v29  ;;  %v137_v31 = vmul.f32 %v128_v28, %v128_v28 }
 0x100   :  { %v138_v32 = vsub.f32 %v136_v30, %v137_v31 }
 0x102   :  { %v139_v33 = vadd.f32 0.8, %v138_v32 }
 0x104   :  { %359 = vrsqrt.f32 %v139_v33 }
 0x111   :  { %v360_v38 = vpop.eup %359 }
 0x112   :  { %v142_v39 = vmul.f32 %v360_v38, %v141_v36 }
 0x114   :  { %v144_v41 = vmul.f32 %v142_v39, %v128_v28  ;;  %v149_v42 = vrot.slane %v142_v39, %v148_v37 }
 0x116   :  { %v145_v43 = vsub.f32 %v143_v40, %v144_v41  ;;  %v150_v44 = vmul.f32 %v149_v42, %v116_v12 }
 0x118   :  { %v154_v45 = vrot.slane %v145_v43, %v148_v37 }
 0x11a   :  { %v155_v46 = vadd.f32 %v154_v45, %v150_v44 }
 0x11c   :  { %v156_v47 = vmul.f32 0.2, %v155_v46 }
 0x11e   :  { %v157_v48 = vmax.f32 %v155_v46, %v156_v47 }
 0x120   :  { %v158_v49 = vpack.c.bf16 %v157_v48, %v157_v48 }
 0x122   :  { %338 = vmatmul.mubr.bf16.vlgmr.msra.gmra.mxu1 %v158_v49 }
 0x1e2   :  { %v264_v51 = vpop.f32.mrf.mxu1 }
 0x1e3   :  { %v265_v52 = vadd.f32 %v292_v50, %v264_v51 }
 0x1e4   :  { %v339_v53 = vpop.f32.mrf.mxu1 }
 0x1e5   :  { %361 = vtanh.f32 %v265_v52 }
 0x1e6   :  { %v267_v54 = vpop.f32.mrf.mxu1 }
 0x1e8   :  { %v340_v55 = vpop.f32.mrf.mxu1 }
 0x1f2   :  { %v362_v56 = vpop.eup %361 }
 0x1f3   :  { %v271_v57 = vpack.c.bf16 %v362_v56, %v362_v56 }
 0x1f5   :  { %272 = vst [vmem:[#allocation8] sm:$0xf] %v271_v57 }
 0x1f6   :  { %434 = shalt.err (!%p431_p5)
}
 0x1f7   :  { %282 = dma.vmem_to_hbm [thread:$0]  %s280_s13, 64, %s513_s5, [#allocation4]  }
 0x1f8   :  { %447 = dma.done.wait [#allocation4], 64  }
 0x1f9   :  { %448 = vsyncadd [#allocation4], 4294967232 }
 0x1fa   :  { %286 = vsyncpa [#allocation3], 1 }
 0x1fb   :  { %287 = vsyncpa [#allocation6], 1 }
 0x1fc   :  { %288 = vsyncpa [#allocation4], 1 }

</bundles_post_ra>
